<compile_context>
chip_gen: v7x
topology: tpu7x:2x2x1
jax: 0.10.0
libtpu: 0.0.40
codegen_flags: <defaults>
</compile_context>

<pallas_src>
import functools

import jax
import jax.numpy as jnp
from jax.experimental import pallas as pl
from jax.experimental.pallas import tpu as pltpu

_LANE = 128
_MAX_LANE_WIDTH = 2048                    # lane (last-dim) width cap
_TARGET_BLOCK_BYTES = 8 * 1024 * 1024     # ~8 MiB per grid-step block
_SPLIT_MIN_BYTES = 2 * 1024 * 1024        # above this, force >=2 grid steps (v7x: 2 TCs)
_SMALL_INPUT_BYTES = 1 * 1024 * 1024      # below this, plain jnp beats pallas dispatch


def _sublane(dtype) -> int:
    itemsize = jnp.dtype(dtype).itemsize
    return {4: 8, 2: 16, 1: 32}.get(itemsize, 8)


@functools.lru_cache(maxsize=1)
def _hw_profile():
    """(vmem_limit_bytes, bf16_native) from the local TPU generation."""
    kind = ""
    try:
        kind = jax.devices()[0].device_kind.lower()
    except Exception:
        pass
    is_v7 = "v7" in kind
    bf16_native = ("v6" in kind) or is_v7          # v5e has no bf16 VALU/EUP
    # v7x: 64 MiB physical VMEM per TC -> leave headroom; v5e/v6e: 128 MiB.
    vmem_limit = (48 if is_v7 else 64) * 1024 * 1024
    return vmem_limit, bf16_native


def _rbf_kernel(x_ref, o_ref, *, upcast: bool):
    x = x_ref[...]
    if upcast:
        x = x.astype(jnp.float32)          # no-op for f32; required on v5e for bf16
    o_ref[...] = jnp.exp(-0.5 * x * x).astype(o_ref.dtype)


def _rbf_jnp(x, upcast: bool):
    if upcast:
        return jnp.exp(-0.5 * x.astype(jnp.float32) ** 2).astype(x.dtype)
    return jnp.exp(-0.5 * x * x)


def rbf_pallas(x: jax.Array, *, min_pallas_bytes: int = _SMALL_INPUT_BYTES) -> jax.Array:
    """Elementwise exp(-0.5 * x**2) via a Pallas TPU kernel. Any input shape."""
    orig_shape = x.shape
    if x.size == 0:
        return x

    # torch.exp on integer inputs returns float; mirror that with f32.
    if not jnp.issubdtype(x.dtype, jnp.floating):
        x = x.astype(jnp.float32)
    dtype = x.dtype
    itemsize = jnp.dtype(dtype).itemsize
    total = x.size

    vmem_limit, bf16_native = _hw_profile()
    upcast = not (bf16_native and dtype == jnp.bfloat16)

    # --- small-input fast path: pallas dispatch costs more than it saves -----
    if total * itemsize < min_pallas_bytes:
        return _rbf_jnp(x, upcast)

    sub = _sublane(dtype)                  # dtype-aware (sub, 128) tile granule
    granule = sub * _LANE

    # --- tile-aligned prefix via Pallas; tiny (<granule) tail via plain jnp --
    x_flat = jnp.reshape(x, (-1,))
    aligned = (total // granule) * granule
    tail_n = total - aligned
    if aligned == 0:                       # whole input smaller than one tile
        return jnp.reshape(_rbf_jnp(x_flat, upcast), orig_shape)
    x_main = x_flat[:aligned] if tail_n else x_flat

    # --- lane-dense 2D slab (rows, W), W a large multiple of 128 -------------
    q = aligned // _LANE                   # multiple of `sub`
    m_max = max(1, min(_MAX_LANE_WIDTH // _LANE, q // sub))
    m = 1
    for cand in range(m_max, 0, -1):       # largest m<=m_max dividing q
        if q % cand == 0:
            m = cand
            break
    W = m * _LANE
    rows = aligned // W
    x2d = jnp.reshape(x_main, (rows, W))

    # --- row tile: ~_TARGET_BLOCK_BYTES per block, multiple of `sub` rows ----
    tr_target = max(sub, (_TARGET_BLOCK_BYTES // (W * itemsize)) // sub * sub)
    aligned_bytes = aligned * itemsize
    if rows > tr_target:
        tr = tr_target
    elif aligned_bytes >= _SPLIT_MIN_BYTES and rows >= 2 * sub:
        # medium slab: >=2 grid steps so both v7x TensorCores get work
        tr = ((pl.cdiv(rows, 2) + sub - 1) // sub) * sub
    else:
        tr = rows
    n_blocks = pl.cdiv(rows, tr)           # ragged last block handled by Pallas

    y2d = pl.pallas_call(
        functools.partial(_rbf_kernel, upcast=upcast),
        out_shape=jax.ShapeDtypeStruct((rows, W), dtype),
        grid_spec=pltpu.PrefetchScalarGridSpec(
            num_scalar_prefetch=0,
            grid=(n_blocks,),
            in_specs=[pl.BlockSpec((tr, W), lambda i: (i, 0))],
            out_specs=pl.BlockSpec((tr, W), lambda i: (i, 0)),
        ),
        compiler_params=pltpu.CompilerParams(
            dimension_semantics=("parallel",),
            vmem_limit_bytes=vmem_limit,
        ),
    )(x2d)

    y_flat = jnp.reshape(y2d, (-1,))
    if tail_n:
        # TODO(synk): mask the last block's store in-kernel (scalar-prefetched
        # `total`) to avoid this concat for very large ragged inputs.
        y_flat = jnp.concatenate([y_flat, _rbf_jnp(x_flat[aligned:], upcast)])
    return jnp.reshape(y_flat, orig_shape)


if __name__ == "__main__":
    key = jax.random.PRNGKey(0)
    k1, k2, k3 = jax.random.split(key, 3)

    # small demo input consistent with the module (NCHW); force the Pallas path
    x_small = jax.random.normal(k1, (2, 4, 16, 16), dtype=jnp.float32)
    y_small = jax.block_until_ready(rbf_pallas(x_small, min_pallas_bytes=0))
    assert y_small.shape == x_small.shape and y_small.dtype == x_small.dtype
    assert jnp.allclose(y_small, jnp.exp(-0.5 * x_small ** 2), atol=1e-6, rtol=1e-6)

    # larger tile-aligned input: multi-block pipelined path (default fast-path threshold)
    x_big = jax.random.normal(k2, (512, 2048), dtype=jnp.float32)
    y_big = jax.block_until_ready(rbf_pallas(x_big))
    assert jnp.allclose(y_big, jnp.exp(-0.5 * x_big ** 2), atol=1e-6, rtol=1e-6)

    # ragged (non-tile-aligned) input: aligned-prefix Pallas + jnp tail path
    x_rag = jax.random.normal(k3, (3, 7, 130), dtype=jnp.float32)
    y_rag = jax.block_until_ready(rbf_pallas(x_rag, min_pallas_bytes=0))
    assert y_rag.shape == x_rag.shape
    assert jnp.allclose(y_rag, jnp.exp(-0.5 * x_rag ** 2), atol=1e-6, rtol=1e-6)

    print("KERNEL_OK")
</pallas_src>

<mosaic_0001>
module attributes {stable_mosaic.version = 11 : i64} {
  func.func @_rbf_kernel(%arg0: i32, %arg1: memref<8x256xf32, #tpu.memory_space<vmem>>, %arg2: memref<8x256xf32, #tpu.memory_space<vmem>>) attributes {dimension_semantics = [#tpu.dimension_semantics<parallel>], iteration_bounds = array<i64: 1>, scalar_prefetch = 0 : i64, scratch_operands = 0 : i64, tpu.core_type = #tpu.core_type<tc>, window_params = [{transform_indices = @transform_0, window_bounds = array<i64: 8, 256>}, {transform_indices = @transform_1, window_bounds = array<i64: 8, 256>}]} {
    %c0 = arith.constant 0 : index
    %c0_0 = arith.constant 0 : index
    %0 = vector.load %arg1[%c0, %c0_0] : memref<8x256xf32, #tpu.memory_space<vmem>>, vector<8x256xf32>
    %cst = arith.constant -5.000000e-01 : f32
    %1 = vector.broadcast %cst : f32 to vector<8x256xf32>
    %2 = arith.mulf %1, %0 : vector<8x256xf32>
    %3 = arith.mulf %2, %0 : vector<8x256xf32>
    %4 = math.exp %3 : vector<8x256xf32>
    %c0_1 = arith.constant 0 : index
    %c0_2 = arith.constant 0 : index
    %5 = vector.load %arg2[%c0_1, %c0_2] : memref<8x256xf32, #tpu.memory_space<vmem>>, vector<8x256xf32>
    tpu.vector_store %arg2[%c0_1, %c0_2], %4 {strides = array<i32>} : memref<8x256xf32, #tpu.memory_space<vmem>>, vector<8x256xf32>,
    return
  }
  func.func @transform_0(%arg0: i32) -> (i32, i32) {
    %c0_i32 = arith.constant 0 : i32
    %c0_i32_0 = arith.constant 0 : i32
    return %arg0, %c0_i32 : i32, i32
  }
  func.func @transform_1(%arg0: i32) -> (i32, i32) {
    %c0_i32 = arith.constant 0 : i32
    %c0_i32_0 = arith.constant 0 : i32
    return %arg0, %c0_i32 : i32, i32
  }
}

</mosaic_0001>

<bundles_post_ra>
// kernel: tpu_custom_call.1
= control target key start
LH: loop header
LB: loop body
LE: loop exit
PB: predicated region body
PF: predicated region fallthrough
CT: control target
= control target key end

     0   :  { %6 = vsyncpa [#allocation3], 0  ;;  %s138_s0 = inlined_call_operand.hbm [shape: f32[8,256], index: 0, kind: input, shape index: {}]   ;;  %s139_s1 = inlined_call_operand.hbm [shape: f32[8,256], index: 1, kind: output, shape index: {}]  }
   0x1   :  { %7 = vsyncpa [#allocation4], 0  ;;  %s102_s6 = smov [#allocation2]   ;;  %s54_s10 = scalar_lea.hbm %s138_s0, 256 }
   0x2   :  { %s14_s7 = sshll.u32 %s102_s6, 4  ;;  %p55_p0 = scmp.ne.s32.totalorder %s138_s0, %s54_s10  ;;  %s15_s7 = int_to_ptr.vmem [resolvable:$true] %s14_s7 }
   0x3   :  { %p58_p1 = scmp.lt.u32.totalorder %s54_s10, %s138_s0 }
   0x5   :  { %p60_p2 = pnand %p58_p1, %p55_p0 }
   0x7   :  { %63 = shalt.err (!%p60_p2)
}
   0x8   :  { %s64_s15 = scalar_lea.vmem %s15_s7, 256  ;;  %p69_p4 = scmp.lt.s32.totalorder %s15_s7, %s15_s7 }
   0x9   :  { %p65_p3 = scmp.ne.s32.totalorder %s15_s7, %s64_s15  ;;  %p70_p5 = scmp.lt.s32.totalorder %s64_s15, %s64_s15 }
   0xb   :  { %p71_p6 = por %p70_p5, %p69_p4 }
   0xd   :  { %p72_p7 = pnand %p71_p6, %p65_p3 }
   0xf   :  { %75 = shalt.err (!%p72_p7)
}
  0x10   :  { %17 = dma.hbm_to_vmem [thread:$0]  %s138_s0, 256, %s15_s7, [#allocation3]  }
  0x11   :  { %98 = dma.done.wait [#allocation3], 256  }
  0x12   :  { %99 = vsyncadd [#allocation3], 4294967040  ;;  %v21_v0 = vld [vmem:[#allocation2] sm:$0xff]  ;;  %v22_v1 = vld [vmem:[#allocation2 + $0x8] sm:$0xff]  ;;  %s103_s18 = smov [#allocation5]  }
  0x13   :  { %v23_v2 = vmul.f32 -0.5, %v21_v0  ;;  %v24_v3 = vmul.f32 -0.5, %v22_v1  ;;  %s39_s19 = sshll.u32 %s103_s18, 4  ;;  %s40_s19 = int_to_ptr.vmem [resolvable:$true] %s39_s19 }
  0x14   :  { %s76_s0 = scalar_lea.vmem %s40_s19, 256  ;;  %p81_p9 = scmp.lt.s32.totalorder %s40_s19, %s40_s19 }
  0x15   :  { %v25_v4 = vmul.f32 %v23_v2, %v21_v0  ;;  %v26_v5 = vmul.f32 %v24_v3, %v22_v1  ;;  %p77_p8 = scmp.ne.s32.totalorder %s40_s19, %s76_s0  ;;  %p82_p10 = scmp.lt.s32.totalorder %s76_s0, %s76_s0 }
  0x17   :  { %v27_v6 = vmul.f32 1.442695, %v25_v4  ;;  %v29_v7 = vmul.f32 1.442695, %v26_v5  ;;  %p83_p11 = por %p82_p10, %p81_p9 }
  0x19   :  { %50 = vpow2.f32 %v27_v6  ;;  %p84_p12 = pnand %p83_p11, %p77_p8 }
  0x1a   :  { %52 = vpow2.f32 %v29_v7 }
  0x23   :  { %v51_v8 = vpop.eup %50 }
  0x24   :  { %v53_v9 = vpop.eup %52  ;;  %31 = vst [vmem:[#allocation5] sm:$0xff] %v51_v8 }
  0x25   :  { %32 = vst [vmem:[#allocation5 + $0x8] sm:$0xff] %v53_v9 }
  0x26   :  { %87 = shalt.err (!%p84_p12)
}
  0x27   :  { %s88_s22 = scalar_lea.hbm %s139_s1, 256 }
  0x28   :  { %p89_p13 = scmp.ne.s32.totalorder %s139_s1, %s88_s22  ;;  %p92_p0 = scmp.lt.u32.totalorder %s88_s22, %s139_s1 }
  0x2a   :  { %p94_p1 = pnand %p92_p0, %p89_p13 }
  0x2c   :  { %97 = shalt.err (!%p94_p1)
}
  0x2d   :  { %42 = dma.vmem_to_hbm [thread:$0]  %s40_s19, 256, %s139_s1, [#allocation4]  }
  0x2e   :  { %100 = dma.done.wait [#allocation4], 256  }
  0x2f   :  { %101 = vsyncadd [#allocation4], 4294967040 }
  0x30   :  { %46 = vsyncpa [#allocation3], 1 }
  0x31   :  { %47 = vsyncpa [#allocation4], 1 }

</bundles_post_ra>
